<compile_context>
chip_gen: v6e
topology: v6e:2x2x1
jax: 0.10.0
libtpu: 0.0.40
codegen_flags: <defaults>
</compile_context>

<pallas_src>
import jax
import jax.numpy as jnp
from jax.experimental import pallas as pl
from jax.experimental.pallas import tpu as pltpu

LN_EPS = 1e-5                      # PyTorch nn.LayerNorm default
_FAST_PATH_X_BYTES = 2 << 20       # whole-array single-block path below this
_MIN_BLOCK_BYTES = 256 << 10
_MAX_BLOCK_BYTES = 8 << 20
_VMEM_HEADROOM = 4 << 20


def _pos_enc_kernel(x_ref, pos_ref, gamma_ref, beta_ref, out_ref):
    # x_ref / out_ref: (Bt, Lt, H)   (or (B, L, H) on the fast path)
    # pos_ref:         (Lt, H)       position embeddings for this sequence tile
    # gamma_ref/beta_ref: (1, H)     LayerNorm affine params
    h = x_ref[...].astype(jnp.float32) + pos_ref[...].astype(jnp.float32)[None]

    inv_h = jnp.float32(1.0 / h.shape[-1])               # compile-time constant
    mean = jnp.sum(h, axis=-1, keepdims=True) * inv_h
    centered = h - mean
    var = jnp.sum(centered * centered, axis=-1, keepdims=True) * inv_h
    inv_std = jax.lax.rsqrt(var + LN_EPS)                 # EUP

    y = (centered * inv_std * gamma_ref[...].astype(jnp.float32)
         + beta_ref[...].astype(jnp.float32))
    out_ref[...] = y.astype(out_ref.dtype)


def _usable_vmem_bytes():
    """Half of physical VMEM, capped at 64 MiB (v7x-safe conservative fallback)."""
    physical = 64 << 20
    try:
        info = pltpu.get_tpu_info()
        physical = int(getattr(info, "vmem_capacity_bytes", physical))
    except Exception:
        pass
    return min(physical // 2, 64 << 20)


def _native_sublane(dtype):
    """Sublane multiple per dtype: 8 for f32, 16 for bf16, 32 for int8/fp8."""
    return max(8, 32 // max(1, jnp.dtype(dtype).itemsize))


def _choose_tiles(B, L, H, itemsize, sublane, target_block_bytes):
    """Pick (Bt, Lt) so a (Bt, Lt, H) block is ~target_block_bytes."""
    row_bytes = max(1, H * itemsize)
    rows_target = max(1, int(target_block_bytes) // row_bytes)
    if rows_target >= L:
        Lt = L                                     # whole sequence per block
        Bt = max(1, min(B, rows_target // L))      # grow block over batch
    else:
        Lt = max(sublane, (rows_target // sublane) * sublane)
        if Lt >= L:
            Lt = L
        Bt = 1
    return Bt, Lt


def trainable_positional_encoding(input_feat, pos_emb_table, ln_gamma, ln_beta):
    """input_feat: (B, L, H); pos_emb_table: (max_pos, H); gamma/beta: (H,)."""
    B, L, H = input_feat.shape
    max_pos, Hp = pos_emb_table.shape
    assert Hp == H, "hidden size mismatch"
    assert L <= max_pos, "sequence longer than max_position_embeddings"

    x_dtype = input_feat.dtype
    itemsize = jnp.dtype(x_dtype).itemsize
    pos_itemsize = jnp.dtype(pos_emb_table.dtype).itemsize
    gamma2d = ln_gamma.reshape(1, H)
    beta2d = ln_beta.reshape(1, H)

    usable_vmem = _usable_vmem_bytes()
    x_bytes = B * L * H * itemsize

    # ---------- Fast path: one whole-array block, no grid / pipeline ----------
    if x_bytes <= _FAST_PATH_X_BYTES:
        pos_used = pos_emb_table if L == max_pos else pos_emb_table[:L, :]
        footprint = (2 * x_bytes + L * H * pos_itemsize + 2 * H * 4
                     + 4 * B * L * H * 4)          # includes f32 intermediates
        vmem_limit = int(min(usable_vmem,
                             max(16 << 20, footprint + _VMEM_HEADROOM)))
        return pl.pallas_call(
            _pos_enc_kernel,
            out_shape=jax.ShapeDtypeStruct((B, L, H), x_dtype),
            in_specs=[pl.BlockSpec(memory_space=pltpu.MemorySpace.VMEM)] * 4,
            out_specs=pl.BlockSpec(memory_space=pltpu.MemorySpace.VMEM),
            compiler_params=pltpu.CompilerParams(vmem_limit_bytes=vmem_limit),
        )(input_feat, pos_used, gamma2d, beta2d)

    # ---------- Tiled path ----------
    sublane = _native_sublane(x_dtype)

    # Per-block VMEM cost relative to one x block: double-buffered in + out (4x),
    # double-buffered pos (<=2x), plus ~4 f32-sized intermediates from the
    # in-kernel upcast (16/itemsize x).
    per_block_factor = 4.0 + 2.0 + 4.0 * (4.0 / itemsize)
    target_block_bytes = (usable_vmem - _VMEM_HEADROOM) / per_block_factor
    target_block_bytes = int(max(_MIN_BLOCK_BYTES,
                                 min(_MAX_BLOCK_BYTES, target_block_bytes)))

    Bt, Lt = _choose_tiles(B, L, H, itemsize, sublane, target_block_bytes)
    num_l = pl.cdiv(L, Lt)
    num_b = pl.cdiv(B, Bt)

    # v7x has 2 TensorCores; keep >= 2 grid steps so the "parallel" axes can be
    # sharded instead of serializing the whole stream on one core.
    if num_l * num_b == 1:
        if B > 1:
            Bt = pl.cdiv(B, 2)
            num_b = pl.cdiv(B, Bt)
        elif L >= 2 * sublane:
            Lt = max(sublane, (pl.cdiv(L, 2) // sublane) * sublane)
            num_l = pl.cdiv(L, Lt)

    # Position-table operand: blocks are (Lt, H). Ensure every block the
    # index_map touches (rows [0, num_l*Lt)) is in bounds and the (8,128)
    # block-shape rule holds. Tail x rows past L are read-garbage / masked on
    # write by Pallas and never contaminate valid rows (LayerNorm is row-wise).
    pos_rows_needed = num_l * Lt
    if Lt % 8 == 0:
        if pos_rows_needed <= max_pos:
            pos_operand = pos_emb_table          # no slice copy needed
        else:
            pos_operand = jnp.pad(pos_emb_table[:L, :],
                                  ((0, pos_rows_needed - L), (0, 0)))
    else:
        # Lt == L with L % 8 != 0: single L tile; block leading dim must equal
        # the operand's full leading dim -> slice once (L*H bytes, negligible).
        pos_operand = pos_emb_table if L == max_pos else pos_emb_table[:L, :]

    x_block = Bt * Lt * H * itemsize
    pos_block = Lt * H * pos_itemsize
    f32_block = Bt * Lt * H * 4
    pipeline_bytes = 2 * (2 * x_block + pos_block) + 4 * f32_block
    vmem_limit = int(min(usable_vmem,
                         max(32 << 20, pipeline_bytes + _VMEM_HEADROOM)))

    return pl.pallas_call(
        _pos_enc_kernel,
        out_shape=jax.ShapeDtypeStruct((B, L, H), x_dtype),
        grid_spec=pltpu.PrefetchScalarGridSpec(
            num_scalar_prefetch=0,
            # Batch is the INNER grid axis: pos/gamma/beta block indices do not
            # change across b, so Pallas skips re-fetching them.
            grid=(num_l, num_b),
            in_specs=[
                pl.BlockSpec((Bt, Lt, H), lambda l, b: (b, l, 0)),   # x
                pl.BlockSpec((Lt, H), lambda l, b: (l, 0)),          # pos rows
                pl.BlockSpec((1, H), lambda l, b: (0, 0)),           # gamma
                pl.BlockSpec((1, H), lambda l, b: (0, 0)),           # beta
            ],
            out_specs=pl.BlockSpec((Bt, Lt, H), lambda l, b: (b, l, 0)),
        ),
        compiler_params=pltpu.CompilerParams(
            dimension_semantics=("parallel", "parallel"),
            vmem_limit_bytes=vmem_limit,
        ),
    )(input_feat, pos_operand, gamma2d, beta2d)


def reference(input_feat, pos_emb_table, ln_gamma, ln_beta):
    B, L, H = input_feat.shape
    h = input_feat.astype(jnp.float32) + pos_emb_table[:L, :].astype(jnp.float32)[None]
    mean = jnp.mean(h, axis=-1, keepdims=True)
    var = jnp.mean((h - mean) ** 2, axis=-1, keepdims=True)
    normed = (h - mean) / jnp.sqrt(var + LN_EPS)
    return normed * ln_gamma + ln_beta


if __name__ == "__main__":
    # --- Small shapes matching the module's forward (fast path) ---
    max_position_embeddings = 16
    hidden_size = 32
    B, L = 2, 8

    key = jax.random.PRNGKey(0)
    k_pos, k_x, k_pos2, k_x2 = jax.random.split(key, 4)

    # nn.Embedding default init: N(0, 1); LayerNorm: gamma=1, beta=0.
    pos_emb_table = jax.random.normal(
        k_pos, (max_position_embeddings, hidden_size), dtype=jnp.float32)
    ln_gamma = jnp.ones((hidden_size,), dtype=jnp.float32)
    ln_beta = jnp.zeros((hidden_size,), dtype=jnp.float32)
    input_feat = jax.random.normal(k_x, (B, L, hidden_size), dtype=jnp.float32)

    out = jax.block_until_ready(
        trainable_positional_encoding(input_feat, pos_emb_table, ln_gamma, ln_beta))
    ref = reference(input_feat, pos_emb_table, ln_gamma, ln_beta)
    assert out.shape == (B, L, hidden_size)
    assert jnp.allclose(out, ref, atol=1e-5, rtol=1e-5), "fast-path mismatch"

    # --- Moderate shape to exercise the tiled (grid) path ---
    max_pos2, H2, B2, L2 = 1024, 256, 4, 640
    pos_tbl2 = jax.random.normal(k_pos2, (max_pos2, H2), dtype=jnp.float32)
    gamma2 = jnp.ones((H2,), dtype=jnp.float32)
    beta2 = jnp.zeros((H2,), dtype=jnp.float32)
    x2 = jax.random.normal(k_x2, (B2, L2, H2), dtype=jnp.float32)

    out2 = jax.block_until_ready(
        trainable_positional_encoding(x2, pos_tbl2, gamma2, beta2))
    ref2 = reference(x2, pos_tbl2, gamma2, beta2)
    assert out2.shape == (B2, L2, H2)
    assert jnp.allclose(out2, ref2, atol=1e-5, rtol=1e-5), "tiled-path mismatch"

    print("KERNEL_OK")
</pallas_src>

<mosaic_0001>
module attributes {stable_mosaic.version = 11 : i64} {
  func.func @_pos_enc_kernel(%arg0: memref<2x8x32xf32, #tpu.memory_space<vmem>>, %arg1: memref<8x32xf32, #tpu.memory_space<vmem>>, %arg2: memref<1x32xf32, #tpu.memory_space<vmem>>, %arg3: memref<1x32xf32, #tpu.memory_space<vmem>>, %arg4: memref<2x8x32xf32, #tpu.memory_space<vmem>>) attributes {dimension_semantics = [], scalar_prefetch = 0 : i64, scratch_operands = 0 : i64, tpu.core_type = #tpu.core_type<tc>} {
    %c0 = arith.constant 0 : index
    %c0_0 = arith.constant 0 : index
    %c0_1 = arith.constant 0 : index
    %0 = vector.load %arg0[%c0, %c0_0, %c0_1] : memref<2x8x32xf32, #tpu.memory_space<vmem>>, vector<2x8x32xf32>
    %c0_2 = arith.constant 0 : index
    %c0_3 = arith.constant 0 : index
    %1 = vector.load %arg1[%c0_2, %c0_3] : memref<8x32xf32, #tpu.memory_space<vmem>>, vector<8x32xf32>
    %2 = vector.shape_cast %1 : vector<8x32xf32> to vector<1x8x32xf32>
    %3 = vector.broadcast %2 : vector<1x8x32xf32> to vector<2x8x32xf32>
    %4 = arith.addf %0, %3 : vector<2x8x32xf32>
    %cst = arith.constant dense<0.000000e+00> : vector<2x8xf32>
    %5 = vector.multi_reduction <add>, %4, %cst [2] : vector<2x8x32xf32> to vector<2x8xf32>
    %6 = vector.shape_cast %5 : vector<2x8xf32> to vector<2x8x1xf32>
    %cst_4 = arith.constant 3.125000e-02 : f32
    %7 = vector.broadcast %cst_4 : f32 to vector<2x8x1xf32>
    %8 = arith.mulf %6, %7 : vector<2x8x1xf32>
    %9 = vector.broadcast %8 : vector<2x8x1xf32> to vector<2x8x32xf32>
    %10 = arith.subf %4, %9 : vector<2x8x32xf32>
    %11 = arith.mulf %10, %10 : vector<2x8x32xf32>
    %cst_5 = arith.constant dense<0.000000e+00> : vector<2x8xf32>
    %12 = vector.multi_reduction <add>, %11, %cst_5 [2] : vector<2x8x32xf32> to vector<2x8xf32>
    %13 = vector.shape_cast %12 : vector<2x8xf32> to vector<2x8x1xf32>
    %cst_6 = arith.constant 3.125000e-02 : f32
    %14 = vector.broadcast %cst_6 : f32 to vector<2x8x1xf32>
    %15 = arith.mulf %13, %14 : vector<2x8x1xf32>
    %cst_7 = arith.constant 9.99999974E-6 : f32
    %16 = vector.broadcast %cst_7 : f32 to vector<2x8x1xf32>
    %17 = arith.addf %15, %16 : vector<2x8x1xf32>
    %18 = math.rsqrt %17 : vector<2x8x1xf32>
    %19 = vector.broadcast %18 : vector<2x8x1xf32> to vector<2x8x32xf32>
    %20 = arith.mulf %10, %19 : vector<2x8x32xf32>
    %c0_8 = arith.constant 0 : index
    %c0_9 = arith.constant 0 : index
    %21 = vector.load %arg2[%c0_8, %c0_9] : memref<1x32xf32, #tpu.memory_space<vmem>>, vector<1x32xf32>
    %22 = vector.shape_cast %21 : vector<1x32xf32> to vector<1x1x32xf32>
    %23 = vector.broadcast %22 : vector<1x1x32xf32> to vector<2x8x32xf32>
    %24 = arith.mulf %20, %23 : vector<2x8x32xf32>
    %c0_10 = arith.constant 0 : index
    %c0_11 = arith.constant 0 : index
    %25 = vector.load %arg3[%c0_10, %c0_11] : memref<1x32xf32, #tpu.memory_space<vmem>>, vector<1x32xf32>
    %26 = vector.shape_cast %25 : vector<1x32xf32> to vector<1x1x32xf32>
    %27 = vector.broadcast %26 : vector<1x1x32xf32> to vector<2x8x32xf32>
    %28 = arith.addf %24, %27 : vector<2x8x32xf32>
    %c0_12 = arith.constant 0 : index
    %c0_13 = arith.constant 0 : index
    %c0_14 = arith.constant 0 : index
    %29 = vector.load %arg4[%c0_12, %c0_13, %c0_14] : memref<2x8x32xf32, #tpu.memory_space<vmem>>, vector<2x8x32xf32>
    tpu.vector_store %arg4[%c0_12, %c0_13, %c0_14], %28 {strides = array<i32>} : memref<2x8x32xf32, #tpu.memory_space<vmem>>, vector<2x8x32xf32>,
    return
  }
}

</mosaic_0001>

<bundles_post_ra>
// kernel: tpu_custom_call.1
= control target key start
LH: loop header
LB: loop body
LE: loop exit
PB: predicated region body
PF: predicated region fallthrough
CT: control target
= control target key end

     0   :  { %9 = vsyncpa [#allocation3], 0  ;;  %s248_s0 = inlined_call_operand.hbm [shape: f32[2,8,32], index: 0, kind: input, shape index: {}]   ;;  %s249_s1 = inlined_call_operand.hbm [shape: f32[8,32], index: 1, kind: input, shape index: {}]   ;;  %s250_s2 = inlined_call_operand.vmem [shape: f32[1,32], index: 2, kind: input, shape index: {}]   ;;  %s251_s3 = inlined_call_operand.vmem [shape: f32[1,32], index: 3, kind: input, shape index: {}]   ;;  %s252_s4 = inlined_call_operand.hbm [shape: f32[2,8,32], index: 4, kind: output, shape index: {}]  }
   0x1   :  { %10 = vsyncpa [#allocation6], 0 }
   0x2   :  { %11 = vsyncpa [#allocation4], 0  ;;  %s191_s15 = smov [#allocation2]  }
   0x3   :  { %s17_s16 = sshll.u32 %s191_s15, 4  ;;  %s18_s16 = int_to_ptr.vmem [resolvable:$true] %s17_s16 }
   0x4   :  { %s133_s17 = scalar_lea.vmem %s18_s16, 256  ;;  %p138_p1 = scmp.lt.s32.totalorder %s18_s16, %s18_s16 }
   0x5   :  { %p134_p0 = scmp.ne.s32.totalorder %s18_s16, %s133_s17  ;;  %p139_p2 = scmp.lt.s32.totalorder %s133_s17, %s133_s17 }
   0x7   :  { %p140_p3 = por %p139_p2, %p138_p1 }
   0x9   :  { %p141_p4 = pnand %p140_p3, %p134_p0 }
   0xb   :  { %144 = shalt.err (!%p141_p4)
}
   0xc   :  { %s192_s18 = smov 128   ;;  %s193_s19 = smov 8  }
   0xd   :  { %23 = dma.hbm_to_vmem [thread:$0]  %s248_s0, 256, %s18_s16, [#allocation3], %s192_s18, %s192_s18, %s193_s19  }
   0xe   :  { %s194_s22 = smov [#allocation5]  }
   0xf   :  { %s30_s23 = sshll.u32 %s194_s22, 4  ;;  %s31_s23 = int_to_ptr.vmem [resolvable:$true] %s30_s23 }
  0x10   :  { %s153_s24 = scalar_lea.vmem %s31_s23, 128  ;;  %p158_p6 = scmp.lt.s32.totalorder %s31_s23, %s31_s23 }
  0x11   :  { %p154_p5 = scmp.ne.s32.totalorder %s31_s23, %s153_s24  ;;  %p159_p7 = scmp.lt.s32.totalorder %s153_s24, %s153_s24 }
  0x13   :  { %p160_p8 = por %p159_p7, %p158_p6 }
  0x15   :  { %p161_p9 = pnand %p160_p8, %p154_p5 }
  0x17   :  { %164 = shalt.err (!%p161_p9)
}
  0x18   :  { %33 = dma.hbm_to_vmem [thread:$0]  %s249_s1, 128, %s31_s23, [#allocation6]  }
  0x19   :  { %185 = dma.done.wait [#allocation3], 256  }
  0x1a   :  { %186 = vsyncadd [#allocation3], 4294967040 }
  0x1b   :  { %187 = dma.done.wait [#allocation6], 128  }
  0x1c   :  { %188 = vsyncadd [#allocation6], 4294967168  ;;  %v44_v0 = vld [vmem:[#allocation2] sm:$0xff]  ;;  %v46_v1 = vld [vmem:[#allocation5] sm:$0xff]  ;;  %vm49_vm0 = vcmask 261120   ;;  %s195_s29 = smov [#allocation7]  }
  0x1d   :  { %v45_v2 = vld [vmem:[#allocation2 + $0x8] sm:$0xff]  ;;  %v47_v3 = vadd.f32 %v46_v1, %v44_v0  ;;  %v114_v24 = vld [vmem:[%s250_s2] ss:$0 sm:$0xff]  ;;  %s101_s30 = sshll.u32 %s195_s29, 4  ;;  %s102_s30 = int_to_ptr.vmem [resolvable:$true] %s101_s30 }
  0x1e   :  { %v48_v4 = vadd.f32 %v46_v1, %v45_v2  ;;  %v115_v26 = vld [vmem:[%s251_s3] ss:$0 sm:$0xff]  ;;  %s165_s5 = scalar_lea.vmem %s102_s30, 256  ;;  %p170_p11 = scmp.lt.s32.totalorder %s102_s30, %s102_s30 }
  0x1f   :  { %v50_v5 = vsel %vm49_vm0, %v47_v3, 0.0  ;;  %p166_p10 = scmp.ne.s32.totalorder %s102_s30, %s165_s5  ;;  %p171_p12 = scmp.lt.s32.totalorder %s165_s5, %s165_s5 }
  0x20   :  { %51 = vadd.xlane.f32.xlu0 %v50_v5  ;;  %v53_v6 = vsel %vm49_vm0, %v48_v4, 0.0 }
  0x21   :  { %p172_p13 = por %p171_p12, %p170_p11 }
  0x23   :  { %p173_p0 = pnand %p172_p13, %p166_p10 }
  0x24   :  { %54 = vadd.xlane.f32.xlu0 %v53_v6 }
  0xa9   :  { %v52_v7 = vpop.xlane.xlu0 %51 }
  0xaa   :  { %v56_v8 = vmul.f32 0.03125, %v52_v7 }
  0xac   :  { %v58_v9 = vsub.f32 %v47_v3, %v56_v8 }
  0xad   :  { %v55_v10 = vpop.xlane.xlu0 %54 }
  0xae   :  { %v57_v11 = vmul.f32 0.03125, %v55_v10  ;;  %v60_v12 = vmul.f32 %v58_v9, %v58_v9 }
  0xb0   :  { %v59_v13 = vsub.f32 %v48_v4, %v57_v11  ;;  %v62_v14 = vsel %vm49_vm0, %v60_v12, 0.0 }
  0xb1   :  { %63 = vadd.xlane.f32.xlu1 %v62_v14 }
  0xb2   :  { %v61_v15 = vmul.f32 %v59_v13, %v59_v13 }
  0xb4   :  { %v65_v16 = vsel %vm49_vm0, %v61_v15, 0.0 }
  0xb5   :  { %66 = vadd.xlane.f32.xlu1 %v65_v16 }
 0x13a   :  { %v64_v17 = vpop.xlane.xlu1 %63 }
 0x13b   :  { %v68_v18 = vmul.f32 0.03125, %v64_v17 }
 0x13d   :  { %v70_v19 = vadd.f32 1e-05, %v68_v18 }
 0x13e   :  { %v67_v20 = vpop.xlane.xlu1 %66 }
 0x13f   :  { %121 = vrsqrt.f32 %v70_v19  ;;  %v69_v21 = vmul.f32 0.03125, %v67_v20 }
 0x141   :  { %v71_v22 = vadd.f32 1e-05, %v69_v21 }
 0x143   :  { %123 = vrsqrt.f32 %v71_v22 }
 0x14c   :  { %v122_v23 = vpop.eup %121 }
 0x14d   :  { %v74_v25 = vmul.f32 %v122_v23, %v58_v9 }
 0x14f   :  { %v83_v27 = vmul.f32 %v114_v24, %v74_v25 }
 0x150   :  { %v124_v28 = vpop.eup %123 }
 0x151   :  { %v75_v29 = vmul.f32 %v124_v28, %v59_v13  ;;  %v92_v30 = vadd.f32 %v115_v26, %v83_v27 }
 0x153   :  { %v84_v31 = vmul.f32 %v114_v24, %v75_v29  ;;  %94 = vst.msk [vmem:[#allocation7] sm:$0xff] %vm49_vm0, %v92_v30 }
 0x155   :  { %v93_v32 = vadd.f32 %v115_v26, %v84_v31 }
 0x157   :  { %95 = vst.msk [vmem:[#allocation7 + $0x8] sm:$0xff] %vm49_vm0, %v93_v32 }
 0x158   :  { %176 = shalt.err (!%p173_p0)
}
 0x159   :  { %107 = dma.vmem_to_hbm [thread:$0]  %s102_s30, 256, %s252_s4, [#allocation4], %s192_s18, %s192_s18, %s193_s19  }
 0x15a   :  { %189 = dma.done.wait [#allocation4], 256  }
 0x15b   :  { %190 = vsyncadd [#allocation4], 4294967040 }
 0x15c   :  { %111 = vsyncpa [#allocation3], 1 }
 0x15d   :  { %112 = vsyncpa [#allocation6], 1 }
 0x15e   :  { %113 = vsyncpa [#allocation4], 1 }

</bundles_post_ra>
